<compile_context>
chip_gen: v5e
topology: v5e:2x2
jax: 0.10.0
libtpu: 0.0.40
codegen_flags: <defaults>
</compile_context>

<pallas_src>
import functools

import jax
import jax.numpy as jnp
from jax import lax
from jax.experimental import pallas as pl
from jax.experimental.pallas import tpu as pltpu

_HIDDEN = 20


@functools.lru_cache(maxsize=None)
def _vmem_limit_bytes():
    """Scoped-VMEM budget: ~3/4 of physical VMEM, capped at 96 MiB.

    v5e/v6e have 128 MiB VMEM -> 96 MiB; v7x has 64 MiB -> 48 MiB.
    Falls back to the always-safe 32 MiB if the query is unavailable.
    """
    try:
        cap = getattr(pltpu.get_tpu_info(), "vmem_capacity_bytes", None)
    except Exception:  # pragma: no cover - defensive; e.g. interpret mode
        cap = None
    if not cap:
        return 32 * 1024 * 1024
    return int(min(96 * 1024 * 1024, (cap * 3) // 4))


def _mlp_edge_kernel(x_ref, w1_ref, b1_ref, w2_ref, b2_ref, o_ref):
    # x_ref : (TILE_R, P*F)  P edge rows packed per lane-dense VMEM row
    # w1_ref: (P*F, P*H)     block-diagonal first Linear weight (x.dtype)
    # b1_ref: (1, P*H)       first bias tiled P times (f32)
    # w2_ref: (P*H, P)       block-diagonal second Linear weight (f32)
    # b2_ref: (1, 1)         second bias, SMEM scalar
    # o_ref : (TILE_R, P)    packed logits (f32)
    h = jnp.dot(x_ref[...], w1_ref[...], preferred_element_type=jnp.float32)
    h = jnp.maximum(h + b1_ref[...], 0.0)
    logits = jnp.dot(h, w2_ref[...], preferred_element_type=jnp.float32)
    o_ref[...] = (logits + b2_ref[0, 0]).astype(o_ref.dtype)


@functools.partial(jax.jit, static_argnames=("tile_rows",))
def mlp_edge_classifier(x, w1, b1, w2, b2, *, tile_rows=65536):
    """Forward pass.  x: (N, F) f32/bf16 -> logits: (N, 1) f32.

    w1: (F, 20) (i.e. W1^T of the PyTorch layout), b1: (1, 20),
    w2: (1, 20) (PyTorch layout), b2: (1, 1).
    tile_rows: edge rows per grid step (default 65536 ~= 4 MiB/buffer packed).
    """
    n, f = x.shape
    hidden = w1.shape[-1]

    # Edge rows packed per 128-lane VMEM row (8 for F=16); 1 = generic path.
    pack = 128 // f if (f <= 128 and 128 % f == 0) else 1

    # Only copy of x, and only when N is not a multiple of `pack` (<8 rows of
    # pad).  N is never padded to a tile multiple -- partial boundary blocks
    # below handle raggedness.  Supplying N % 8 == 0 keeps this path copy-free.
    if n % pack:
        x = jnp.pad(x, ((0, pack - n % pack), (0, 0)))
    rows = x.shape[0] // pack
    xp = x.reshape(rows, pack * f)  # free row-major re-view, stays in HBM

    # Block-diagonal / tiled parameters (tiny, built on device each call).
    eye = jnp.eye(pack, dtype=jnp.float32)
    w1_bd = jnp.kron(eye, w1.astype(jnp.float32)).astype(x.dtype)  # (P*F, P*H)
    b1_t = jnp.tile(b1.reshape(1, hidden).astype(jnp.float32), (1, pack))
    w2_bd = jnp.kron(eye, w2.reshape(hidden, 1).astype(jnp.float32))  # (P*H, P)
    b2_s = b2.reshape(1, 1).astype(jnp.float32)

    # Packed-row tile: as requested, a multiple of 8 sublanes unless one block
    # covers the whole array.  Grid uses cdiv -> ragged last block is fine.
    tile_r = max(1, tile_rows // pack)
    if tile_r < rows:
        tile_r = max(8, (tile_r // 8) * 8)
    else:
        tile_r = rows
    grid_r = (rows + tile_r - 1) // tile_r

    itemsize = jnp.dtype(x.dtype).itemsize
    out = pl.pallas_call(
        _mlp_edge_kernel,
        out_shape=jax.ShapeDtypeStruct((rows, pack), jnp.float32),
        grid=(grid_r,),
        in_specs=[
            # Packed x tiles: lane-dense, default double-buffered streaming.
            pl.BlockSpec((tile_r, pack * f), lambda i: (i, 0)),
            # Weights / biases: constant block index -> stay VMEM-resident.
            pl.BlockSpec((pack * f, pack * hidden), lambda i: (0, 0)),
            pl.BlockSpec((1, pack * hidden), lambda i: (0, 0)),
            pl.BlockSpec((pack * hidden, pack), lambda i: (0, 0)),
            # Scalar second bias lives in SMEM (no padded VMEM tile).
            pl.BlockSpec(memory_space=pltpu.MemorySpace.SMEM),
        ],
        out_specs=pl.BlockSpec((tile_r, pack), lambda i: (i, 0)),
        compiler_params=pltpu.CompilerParams(
            # TODO(synk): on v7x, confirm both TensorCores shard this axis;
            # if "parallel" does not split it, switch to pltpu.CORE_PARALLEL.
            dimension_semantics=("parallel",),
            vmem_limit_bytes=_vmem_limit_bytes(),
        ),
        cost_estimate=pl.CostEstimate(
            flops=2 * n * hidden * (f + 1),
            transcendentals=0,
            bytes_accessed=xp.size * itemsize + rows * pack * 4
            + w1_bd.size * itemsize,
        ),
    )(xp, w1_bd, b1_t, w2_bd, b2_s)

    # Unpack (rows, P) -> (N, 1): free reshape + tiny trim of pad/garbage rows.
    return out.reshape(rows * pack, 1)[:n]


def make_params(num_node_features, num_edge_features, num_status_features, key):
    """Deterministic synthetic parameters matching MLPEdgeClassifier.__init__."""
    num_input_features = int(
        2 * num_node_features + num_edge_features + num_status_features
    )
    hidden = _HIDDEN
    k1, k2, k3, k4 = jax.random.split(key, 4)
    # Uniform(-1/sqrt(fan_in), 1/sqrt(fan_in)) like torch.nn.Linear default init.
    lim1 = 1.0 / jnp.sqrt(jnp.float32(num_input_features))
    lim2 = 1.0 / jnp.sqrt(jnp.float32(hidden))
    w1 = jax.random.uniform(k1, (num_input_features, hidden), jnp.float32, -lim1, lim1)
    b1 = jax.random.uniform(k2, (1, hidden), jnp.float32, -lim1, lim1)
    w2 = jax.random.uniform(k3, (1, hidden), jnp.float32, -lim2, lim2)  # PyTorch layout
    b2 = jax.random.uniform(k4, (1, 1), jnp.float32, -lim2, lim2)
    return num_input_features, (w1, b1, w2, b2)


def _reference(x, w1, b1, w2, b2):
    h = jnp.maximum(jnp.dot(x, w1, precision=lax.Precision.HIGHEST) + b1, 0.0)
    return jnp.dot(h, w2.T, precision=lax.Precision.HIGHEST) + b2


if __name__ == "__main__":
    key = jax.random.PRNGKey(0)
    k_params, k_params2, k_x1, k_x2, k_x3 = jax.random.split(key, 5)

    # Module-consistent config: F = 2*4 + 3 + 5 = 16 -> pack = 8 fast path.
    f16, (w1, b1, w2, b2) = make_params(4, 3, 5, k_params)

    # Case 1: tiny f32 problem, N multiple of 8 (zero-copy packing, 1 block).
    n1 = 8
    x1 = jax.random.normal(k_x1, (n1, f16), jnp.float32)
    out1 = jax.block_until_ready(mlp_edge_classifier(x1, w1, b1, w2, b2))
    ref1 = _reference(x1, w1, b1, w2, b2)
    assert out1.shape == (n1, 1)
    assert jnp.allclose(out1, ref1, atol=1e-4, rtol=1e-4)

    # Case 2: ragged N + bf16 input + multi-step grid with a partial boundary
    # block (tile_rows=64 edge rows -> 8 packed rows per grid step).
    n2 = 300
    x2 = jax.random.normal(k_x2, (n2, f16), jnp.float32).astype(jnp.bfloat16)
    out2 = jax.block_until_ready(
        mlp_edge_classifier(x2, w1, b1, w2, b2, tile_rows=64))
    ref2 = _reference(x2.astype(jnp.float32), w1, b1, w2, b2)
    assert out2.shape == (n2, 1)
    # bf16 x and bf16-cast w1 on the MXU -> bf16-level tolerance vs f32 ref.
    assert jnp.allclose(out2, ref2, atol=3e-2, rtol=3e-2)

    # Case 3: F = 2*5 + 3 + 7 = 20 does not divide 128 -> generic pack=1 path.
    f20, (w1b, b1b, w2b, b2b) = make_params(5, 3, 7, k_params2)
    n3 = 300
    x3 = jax.random.normal(k_x3, (n3, f20), jnp.float32)
    out3 = jax.block_until_ready(
        mlp_edge_classifier(x3, w1b, b1b, w2b, b2b, tile_rows=64))
    ref3 = _reference(x3, w1b, b1b, w2b, b2b)
    assert out3.shape == (n3, 1)
    assert jnp.allclose(out3, ref3, atol=1e-4, rtol=1e-4)

    print("KERNEL_OK")
</pallas_src>

<mosaic_0001>
module attributes {stable_mosaic.version = 11 : i64} {
  func.func @_mlp_edge_kernel(%arg0: i32, %arg1: memref<1x128xf32, #tpu.memory_space<vmem>>, %arg2: memref<128x160xf32, #tpu.memory_space<vmem>>, %arg3: memref<1x160xf32, #tpu.memory_space<vmem>>, %arg4: memref<160x8xf32, #tpu.memory_space<vmem>>, %arg5: memref<1x1xf32, #tpu.memory_space<smem>>, %arg6: memref<1x8xf32, #tpu.memory_space<vmem>>) attributes {dimension_semantics = [#tpu.dimension_semantics<parallel>], iteration_bounds = array<i64: 1>, scalar_prefetch = 0 : i64, scratch_operands = 0 : i64, tpu.core_type = #tpu.core_type<tc>, window_params = [{transform_indices = @transform_0, window_bounds = array<i64: 1, 128>}, {pipeline_mode = #tpu.pipeline_mode<synchronous>, transform_indices = @transform_1, window_bounds = array<i64: 128, 160>}, {pipeline_mode = #tpu.pipeline_mode<synchronous>, transform_indices = @transform_2, window_bounds = array<i64: 1, 160>}, {pipeline_mode = #tpu.pipeline_mode<synchronous>, transform_indices = @transform_3, window_bounds = array<i64: 160, 8>}, {transform_indices = @transform_4, window_bounds = array<i64: 1, 1>}, {transform_indices = @transform_5, window_bounds = array<i64: 1, 8>}]} {
    %c0 = arith.constant 0 : index
    %c0_0 = arith.constant 0 : index
    %0 = vector.load %arg1[%c0, %c0_0] : memref<1x128xf32, #tpu.memory_space<vmem>>, vector<1x128xf32>
    %c0_1 = arith.constant 0 : index
    %c0_2 = arith.constant 0 : index
    %1 = vector.load %arg2[%c0_1, %c0_2] : memref<128x160xf32, #tpu.memory_space<vmem>>, vector<128x160xf32>
    %cst = arith.constant dense<0.000000e+00> : vector<1x160xf32>
    %2 = tpu.matmul %0, %1, %cst {dimension_numbers = #tpu.dot_dimension_numbers<[1], [0], [0], [1], [0, 0, 1, 1], [], []>} : vector<1x128xf32>, vector<128x160xf32>, vector<1x160xf32> -> vector<1x160xf32>
    %c0_3 = arith.constant 0 : index
    %c0_4 = arith.constant 0 : index
    %3 = vector.load %arg3[%c0_3, %c0_4] : memref<1x160xf32, #tpu.memory_space<vmem>>, vector<1x160xf32>
    %4 = arith.addf %2, %3 : vector<1x160xf32>
    %cst_5 = arith.constant 0.000000e+00 : f32
    %5 = vector.broadcast %cst_5 : f32 to vector<1x160xf32>
    %6 = arith.maximumf %4, %5 : vector<1x160xf32>
    %c0_6 = arith.constant 0 : index
    %c0_7 = arith.constant 0 : index
    %7 = vector.load %arg4[%c0_6, %c0_7] : memref<160x8xf32, #tpu.memory_space<vmem>>, vector<160x8xf32>
    %cst_8 = arith.constant dense<0.000000e+00> : vector<1x8xf32>
    %8 = tpu.matmul %6, %7, %cst_8 {dimension_numbers = #tpu.dot_dimension_numbers<[1], [0], [0], [1], [0, 0, 1, 1], [], []>} : vector<1x160xf32>, vector<160x8xf32>, vector<1x8xf32> -> vector<1x8xf32>
    %c0_9 = arith.constant 0 : index
    %c0_10 = arith.constant 0 : index
    %9 = memref.load %arg5[%c0_9, %c0_10] : memref<1x1xf32, #tpu.memory_space<smem>>
    %10 = vector.broadcast %9 : f32 to vector<1x8xf32>
    %11 = arith.addf %8, %10 : vector<1x8xf32>
    %c0_11 = arith.constant 0 : index
    %c0_12 = arith.constant 0 : index
    %12 = vector.load %arg6[%c0_11, %c0_12] : memref<1x8xf32, #tpu.memory_space<vmem>>, vector<1x8xf32>
    tpu.vector_store %arg6[%c0_11, %c0_12], %11 {strides = array<i32>} : memref<1x8xf32, #tpu.memory_space<vmem>>, vector<1x8xf32>,
    return
  }
  func.func @transform_0(%arg0: i32) -> (i32, i32) {
    %c0_i32 = arith.constant 0 : i32
    %c0_i32_0 = arith.constant 0 : i32
    return %arg0, %c0_i32 : i32, i32
  }
  func.func @transform_1(%arg0: i32) -> (i32, i32) {
    %c0_i32 = arith.constant 0 : i32
    %c0_i32_0 = arith.constant 0 : i32
    %c0_i32_1 = arith.constant 0 : i32
    return %c0_i32, %c0_i32_0 : i32, i32
  }
  func.func @transform_2(%arg0: i32) -> (i32, i32) {
    %c0_i32 = arith.constant 0 : i32
    %c0_i32_0 = arith.constant 0 : i32
    %c0_i32_1 = arith.constant 0 : i32
    return %c0_i32, %c0_i32_0 : i32, i32
  }
  func.func @transform_3(%arg0: i32) -> (i32, i32) {
    %c0_i32 = arith.constant 0 : i32
    %c0_i32_0 = arith.constant 0 : i32
    %c0_i32_1 = arith.constant 0 : i32
    return %c0_i32, %c0_i32_0 : i32, i32
  }
  func.func @transform_4(%arg0: i32) -> (i32, i32) {
    %c0_i32 = arith.constant 0 : i32
    %c0_i32_0 = arith.constant 0 : i32
    %c0_i32_1 = arith.constant 0 : i32
    return %c0_i32, %c0_i32_0 : i32, i32
  }
  func.func @transform_5(%arg0: i32) -> (i32, i32) {
    %c0_i32 = arith.constant 0 : i32
    %c0_i32_0 = arith.constant 0 : i32
    return %arg0, %c0_i32 : i32, i32
  }
}

</mosaic_0001>

<bundles_post_ra>
// kernel: mlp_edge_classifier.1
= control target key start
LH: loop header
LB: loop body
LE: loop exit
PB: predicated region body
PF: predicated region fallthrough
CT: control target
= control target key end

     0   :  { %s414_s0 = inlined_call_operand.vmem [shape: f32[1,128], index: 0, kind: input, shape index: {}]   ;;  %s415_s1 = inlined_call_operand.vmem [shape: f32[128,160], index: 1, kind: input, shape index: {}]   ;;  %s416_s2 = inlined_call_operand.vmem [shape: f32[1,160], index: 2, kind: input, shape index: {}]   ;;  %s417_s3 = inlined_call_operand.vmem [shape: f32[160,8], index: 3, kind: input, shape index: {}]   ;;  %s418_s4 = inlined_call_operand.<no memory space> [shape: f32[1,1], index: 4, kind: input, shape index: {}]   ;;  %s419_s5 = inlined_call_operand.hbm [shape: f32[1,8], index: 5, kind: output, shape index: {}]  }
   0x1   :  { %v53_v0 = vld [vmem:[%s415_s1 + $0xf0] sm:$0xff]  ;;  %v51_v1 = vld [vmem:[%s415_s1 + $0xe0] sm:$0xff]  ;;  %v54_v2 = vld [vmem:[%s415_s1 + $0xf8] sm:$0xff] }
   0x2   :  { %61 = vmatpush.msra.mxu0 %v53_v0  ;;  %81 = vmatpush.msra.mxu1 %v54_v2  ;;  %v52_v3 = vld [vmem:[%s415_s1 + $0xe8] sm:$0xff]  ;;  %v49_v4 = vld [vmem:[%s415_s1 + $0xd0] sm:$0xff]  ;;  %v50_v5 = vld [vmem:[%s415_s1 + $0xd8] sm:$0xff] }
   0x3   :  { %v47_v6 = vld [vmem:[%s415_s1 + $0xc0] sm:$0xff]  ;;  %v48_v7 = vld [vmem:[%s415_s1 + $0xc8] sm:$0xff]  ;;  %v45_v8 = vld [vmem:[%s415_s1 + $0xb0] sm:$0xff] }
   0x4   :  { %62 = vmatpush.msra.mxu0 %v51_v1  ;;  %82 = vmatpush.msra.mxu1 %v52_v3  ;;  %v46_v9 = vld [vmem:[%s415_s1 + $0xb8] sm:$0xff]  ;;  %v43_v10 = vld [vmem:[%s415_s1 + $0xa0] sm:$0xff]  ;;  %v44_v11 = vld [vmem:[%s415_s1 + $0xa8] sm:$0xff] }
   0x5   :  { %v41_v12 = vld [vmem:[%s415_s1 + $0x90] sm:$0xff]  ;;  %v42_v13 = vld [vmem:[%s415_s1 + $0x98] sm:$0xff]  ;;  %v39_v16 = vld [vmem:[%s415_s1 + $0x80] sm:$0xff] }
   0x6   :  { %63 = vmatpush.msra.mxu0 %v49_v4  ;;  %83 = vmatpush.msra.mxu1 %v50_v5  ;;  %v118_v14 = vld [vmem:[%s417_s3 + $0x78] sm:$0xff]  ;;  %v117_v15 = vld [vmem:[%s417_s3 + $0x70] sm:$0xff]  ;;  %v40_v17 = vld [vmem:[%s415_s1 + $0x88] sm:$0xff] }
   0x7   :  { %129 = vmatpush.msra.mxu2 %v118_v14  ;;  %v116_v18 = vld [vmem:[%s417_s3 + $0x68] sm:$0xff]  ;;  %v37_v19 = vld [vmem:[%s415_s1 + $0x70] sm:$0xff]  ;;  %v38_v20 = vld [vmem:[%s415_s1 + $0x78] sm:$0xff] }
   0x8   :  { %64 = vmatpush.msra.mxu0 %v47_v6  ;;  %84 = vmatpush.msra.mxu1 %v48_v7  ;;  %v115_v21 = vld [vmem:[%s417_s3 + $0x60] sm:$0xff] }
   0x9   :  { %130 = vmatpush.msra.mxu2 %v117_v15 }
   0xa   :  { %65 = vmatpush.msra.mxu0 %v45_v8  ;;  %85 = vmatpush.msra.mxu1 %v46_v9 }
   0xc   :  { %66 = vmatpush.msra.mxu0 %v43_v10  ;;  %86 = vmatpush.msra.mxu1 %v44_v11 }
   0xe   :  { %67 = vmatpush.msra.mxu0 %v41_v12  ;;  %87 = vmatpush.msra.mxu1 %v42_v13 }
  0x10   :  { %68 = vmatpush.msra.mxu0 %v39_v16  ;;  %88 = vmatpush.msra.mxu1 %v40_v17 }
  0x11   :  { %11 = vsyncpa [#allocation4], 0  ;;  %v35_v22 = vld [vmem:[%s415_s1 + $0x60] sm:$0xff]  ;;  %v36_v23 = vld [vmem:[%s415_s1 + $0x68] sm:$0xff]  ;;  %131 = vmatpush.msra.mxu2 %v116_v18  ;;  %vm125_vm0 = vcmask 261120   ;;  %v124_v62 = vstv %s418_s4  ;;  %s178_s28 = sshll.u32 %s419_s5, 4  ;;  %s179_s28 = int_to_ptr.hbm [resolvable:$true] %s178_s28 }
  0x12   :  { %69 = vmatpush.msra.mxu0 %v37_v19  ;;  %89 = vmatpush.msra.mxu1 %v38_v20  ;;  %v114_v24 = vld [vmem:[%s417_s3 + $0x58] sm:$0xff]  ;;  %v33_v25 = vld [vmem:[%s415_s1 + $0x50] sm:$0xff]  ;;  %v31_v28 = vld [vmem:[%s415_s1 + $0x40] sm:$0xff]  ;;  %vm169_vm1 = vcmask 57344  }
  0x13   :  { %v34_v26 = vld [vmem:[%s415_s1 + $0x58] sm:$0xff]  ;;  %132 = vmatpush.msra.mxu2 %v115_v21  ;;  %v113_v27 = vld [vmem:[%s417_s3 + $0x50] sm:$0xff]  ;;  %v32_v29 = vld [vmem:[%s415_s1 + $0x48] sm:$0xff] }
  0x14   :  { %70 = vmatpush.msra.mxu0 %v35_v22  ;;  %90 = vmatpush.msra.mxu1 %v36_v23  ;;  %v112_v30 = vld [vmem:[%s417_s3 + $0x48] sm:$0xff]  ;;  %v29_v31 = vld [vmem:[%s415_s1 + $0x30] sm:$0xff]  ;;  %v30_v32 = vld [vmem:[%s415_s1 + $0x38] sm:$0xff] }
  0x15   :  { %133 = vmatpush.msra.mxu2 %v114_v24  ;;  %v111_v33 = vld [vmem:[%s417_s3 + $0x40] sm:$0xff]  ;;  %v28_v35 = vld [vmem:[%s415_s1 + $0x28] sm:$0xff]  ;;  %v110_v36 = vld [vmem:[%s417_s3 + $0x38] sm:$0xff] }
  0x16   :  { %71 = vmatpush.msra.mxu0 %v33_v25  ;;  %91 = vmatpush.msra.mxu1 %v34_v26  ;;  %v27_v34 = vld [vmem:[%s415_s1 + $0x20] sm:$0xff]  ;;  %v25_v37 = vld [vmem:[%s415_s1 + $0x10] sm:$0xff]  ;;  %v26_v38 = vld [vmem:[%s415_s1 + $0x18] sm:$0xff] }
  0x17   :  { %134 = vmatpush.msra.mxu2 %v113_v27  ;;  %v109_v39 = vld [vmem:[%s417_s3 + $0x30] sm:$0xff]  ;;  %v23_v40 = vld [vmem:[%s415_s1] sm:$0xff]  ;;  %v24_v41 = vld [vmem:[%s415_s1 + $0x8] sm:$0xff] }
  0x18   :  { %72 = vmatpush.msra.mxu0 %v31_v28  ;;  %92 = vmatpush.msra.mxu1 %v32_v29  ;;  %v22_v42 = vld [vmem:[%s414_s0] sm:$0x1]  ;;  %v108_v43 = vld [vmem:[%s417_s3 + $0x28] sm:$0xff]  ;;  %v106_v45 = vld [vmem:[%s417_s3 + $0x18] sm:$0xff] }
  0x19   :  { %135 = vmatpush.msra.mxu2 %v112_v30  ;;  %v107_v44 = vld [vmem:[%s417_s3 + $0x20] sm:$0xff]  ;;  %v105_v46 = vld [vmem:[%s417_s3 + $0x10] sm:$0xff]  ;;  %v122_v47 = vld [vmem:[%s417_s3 + $0x98] sm:$0xff] }
  0x1a   :  { %73 = vmatpush.msra.mxu0 %v29_v31  ;;  %93 = vmatpush.msra.mxu1 %v30_v32  ;;  %v104_v48 = vld [vmem:[%s417_s3 + $0x8] sm:$0xff]  ;;  %v121_v49 = vld [vmem:[%s417_s3 + $0x90] sm:$0xff]  ;;  %v103_v50 = vld [vmem:[%s417_s3] sm:$0xff] }
  0x1b   :  { %136 = vmatpush.msra.mxu2 %v111_v33  ;;  %161 = vmatpush.msra.mxu3 %v122_v47  ;;  %v120_v51 = vld [vmem:[%s417_s3 + $0x88] sm:$0xff]  ;;  %v119_v52 = vld [vmem:[%s417_s3 + $0x80] sm:$0xff]  ;;  %s215_s3 = smov [#allocation3]  }
  0x1c   :  { %74 = vmatpush.msra.mxu0 %v27_v34  ;;  %94 = vmatpush.msra.mxu1 %v28_v35  ;;  %v55_v53 = vld [vmem:[%s416_s2] sm:$0x3]  ;;  %s176_s26 = sshll.u32 %s215_s3, 4  ;;  %s177_s26 = int_to_ptr.vmem [resolvable:$true] %s176_s26 }
  0x1d   :  { %137 = vmatpush.msra.mxu2 %v110_v36  ;;  %162 = vmatpush.msra.mxu3 %v121_v49  ;;  %v57_v54 = vperm.slane %v55_v53, 0  ;;  %v58_v55 = vperm.slane %v55_v53, 1 }
  0x1e   :  { %75 = vmatpush.msra.mxu0 %v25_v37  ;;  %95 = vmatpush.msra.mxu1 %v26_v38 }
  0x1f   :  { %138 = vmatpush.msra.mxu2 %v109_v39  ;;  %163 = vmatpush.msra.mxu3 %v120_v51 }
  0x20   :  { %76 = vmatpush.msra.mxu0 %v23_v40  ;;  %96 = vmatpush.msra.mxu1 %v24_v41 }
  0x21   :  { %77 = vmatmul.f32.vlgmr.msra.gmra.mxu0 %v22_v42  ;;  %97 = vmatmul.f32.vlgmr.msra.gmra.mxu1 %v22_v42 }
  0x22   :  { %139 = vmatpush.msra.mxu2 %v108_v43  ;;  %164 = vmatpush.msra.mxu3 %v119_v52 }
  0x24   :  { %140 = vmatpush.msra.mxu2 %v107_v44 }
  0x26   :  { %141 = vmatpush.msra.mxu2 %v106_v45 }
  0x28   :  { %142 = vmatpush.msra.mxu2 %v105_v46 }
  0x2a   :  { %143 = vmatpush.msra.mxu2 %v104_v48 }
  0x2c   :  { %144 = vmatpush.msra.mxu2 %v103_v50 }
  0x9e   :  { %v78_v56 = vpop.f32.mrf.mxu0  ;;  %v98_v57 = vpop.f32.mrf.mxu1 }
  0x9f   :  { %v79_v58 = vadd.f32 %v78_v56, %v57_v54  ;;  %v99_v59 = vadd.f32 %v98_v57, %v58_v55 }
  0xa1   :  { %v101_v60 = vmax.f32 %v79_v58, 0.0  ;;  %v102_v61 = vmax.f32 %v99_v59, 0.0 }
  0xa3   :  { %145 = vmatmul.f32.vlgmr.msra.gmra.mxu2 %v101_v60  ;;  %187 = vmatmul.msk.f32.vlgmr.msra.gmra.mxu3 %vm125_vm0, %v102_v61 }
 0x126   :  { %v146_v63 = vpop.f32.mrf.mxu2  ;;  %v166_v0 = vpop.f32.mrf.mxu3 }
 0x127   :  { %v147_v1 = vadd.f32 %v146_v63, %v124_v62 }
 0x129   :  { %v167_v2 = vadd.f32 %v166_v0, %v147_v1 }
 0x12b   :  { %170 = vst.msk [vmem:[#allocation3] sm:$0x1] %vm169_vm1, %v167_v2 }
 0x12c   :  { %181 = dma.vmem_to_hbm [thread:$0]  %s177_s26, 16, %s179_s28, [#allocation4]  }
 0x12d   :  { %213 = dma.done.wait [#allocation4], 16  }
 0x12e   :  { %214 = vsyncadd [#allocation4], 4294967280 }
 0x12f   :  { %186 = vsyncpa [#allocation4], 1 }

</bundles_post_ra>
